<compile_context>
chip_gen: v7x
topology: tpu7x:2x2x1
jax: 0.10.0
libtpu: 0.0.40
codegen_flags: <defaults>
</compile_context>

<pallas_src>
import jax
import jax.numpy as jnp
from jax.experimental import pallas as pl
from jax.experimental.pallas import tpu as pltpu


def _round_up(a, m):
    return ((a + m - 1) // m) * m


def mlp_kernel(x_ref, w1_ref, b1_ref, w2_ref, b2_ref, o_ref):
    x = x_ref[...]                      # (TB, input_size)  f32
    w1 = w1_ref[...]                    # (input_size, hidden)
    input_size = x.shape[1]

    # layer1: x @ W1 + b1
    if input_size <= 8:
        # Tiny-K matmul is a poor MXU fit: unroll as VPU multiply-adds on
        # already-resident vregs (static trip count -> fully unrolled).
        h = x[:, 0:1] * w1[0:1, :]
        for k in range(1, input_size):
            h = h + x[:, k:k + 1] * w1[k:k + 1, :]
    else:
        h = jnp.dot(x, w1, preferred_element_type=jnp.float32)
    h = h + b1_ref[...]                 # bias broadcast over batch (f32 VPU)

    # ReLU (f32 on the VPU -- safe on v5e which has no bf16 VPU path)
    h = jnp.maximum(h, 0.0)

    # layer2: h @ W2 + b2   (K = hidden on the MXU, f32 accumulation)
    out = jnp.dot(h, w2_ref[...], preferred_element_type=jnp.float32)
    out = out + b2_ref[...]

    o_ref[...] = out.astype(o_ref.dtype)


def neural_network_forward(x, w1, b1, w2, b2, *, batch_tile=2048):
    """x: (B, input_size); w1: (input_size, hidden); b1: (1, hidden);
    w2: (hidden, num_classes); b2: (1, num_classes).  Returns (B, num_classes)."""
    B, input_size = x.shape
    hidden = w1.shape[1]
    num_classes = w2.shape[1]

    # --- batch tile: multiple of 8 sublanes, capped so the grid keeps >= 2
    #     roughly balanced steps (keeps both v7x TensorCores busy), and capped
    #     at batch_tile to bound VMEM / keep DMAs pipelined. ---
    TB = min(batch_tile, max(8, _round_up(pl.cdiv(B, 2), 8)))
    grid = (pl.cdiv(B, TB),)            # ragged last tile handled by Pallas

    # --- advisory cost estimate for the XLA scheduler (true byte counts) ---
    flops = 2 * B * (input_size * hidden + hidden * num_classes)
    bytes_accessed = 4 * (B * input_size + input_size * hidden + hidden
                          + hidden * num_classes + num_classes
                          + B * num_classes)
    cost = pl.CostEstimate(flops=flops, transcendentals=0,
                           bytes_accessed=bytes_accessed)

    out = pl.pallas_call(
        mlp_kernel,
        out_shape=jax.ShapeDtypeStruct((B, num_classes), jnp.float32),
        grid_spec=pltpu.PrefetchScalarGridSpec(
            num_scalar_prefetch=0,
            grid=grid,
            in_specs=[
                pl.BlockSpec((TB, input_size), lambda i: (i, 0)),      # x: streamed
                pl.BlockSpec((input_size, hidden), lambda i: (0, 0)),  # w1: resident
                pl.BlockSpec((1, hidden), lambda i: (0, 0)),           # b1: resident
                pl.BlockSpec((hidden, num_classes), lambda i: (0, 0)), # w2: resident
                pl.BlockSpec((1, num_classes), lambda i: (0, 0)),      # b2: resident
            ],
            out_specs=pl.BlockSpec((TB, num_classes), lambda i: (i, 0)),
        ),
        compiler_params=pltpu.CompilerParams(
            # batch axis is embarrassingly parallel -> 2-TC split on v7x
            dimension_semantics=("parallel",),
            # tiny footprint (~TB*(input+classes)*4B double-buffered + weights);
            # explicit budget keeps the same tiling safe on v7x's 64 MiB VMEM.
            vmem_limit_bytes=32 * 1024 * 1024,
        ),
        cost_estimate=cost,
    )(x, w1, b1, w2, b2)

    return out


def init_params(key, input_size, hidden_size, num_classes):
    """Deterministic init mimicking PyTorch nn.Linear (uniform ±1/sqrt(fan_in)).
    Weights are stored as (in_features, out_features), i.e. PyTorch W.T."""
    k1, k2, k3, k4 = jax.random.split(key, 4)
    bound1 = 1.0 / (input_size ** 0.5)
    bound2 = 1.0 / (hidden_size ** 0.5)
    w1 = jax.random.uniform(k1, (input_size, hidden_size), jnp.float32,
                            -bound1, bound1)
    b1 = jax.random.uniform(k2, (1, hidden_size), jnp.float32, -bound1, bound1)
    w2 = jax.random.uniform(k3, (hidden_size, num_classes), jnp.float32,
                            -bound2, bound2)
    b2 = jax.random.uniform(k4, (1, num_classes), jnp.float32, -bound2, bound2)
    return w1, b1, w2, b2


if __name__ == "__main__":
    # Iris-like sizes: 4 input features, 32 hidden units, 3 classes, batch of 8.
    input_size, hidden_size, num_classes = 4, 32, 3
    batch = 8

    key = jax.random.PRNGKey(0)
    kx, kp = jax.random.split(key)
    x = jax.random.normal(kx, (batch, input_size), dtype=jnp.float32)
    w1, b1, w2, b2 = init_params(kp, input_size, hidden_size, num_classes)

    out = neural_network_forward(x, w1, b1, w2, b2)
    out = jax.block_until_ready(out)

    # Pure-JAX reference check of the same forward pass.
    ref = jnp.maximum(x @ w1 + b1, 0.0) @ w2 + b2
    assert out.shape == (batch, num_classes)
    assert jnp.allclose(out, ref, atol=1e-5, rtol=1e-5)

    # Also exercise a batch large enough to use multiple grid steps and a
    # ragged final tile (no wrapper-side pad/slice).
    big_b = 1037
    xb = jax.random.normal(kx, (big_b, input_size), dtype=jnp.float32)
    outb = jax.block_until_ready(neural_network_forward(xb, w1, b1, w2, b2))
    refb = jnp.maximum(xb @ w1 + b1, 0.0) @ w2 + b2
    assert outb.shape == (big_b, num_classes)
    assert jnp.allclose(outb, refb, atol=1e-5, rtol=1e-5)

    print("KERNEL_OK")
</pallas_src>

<mosaic_0001>
module attributes {stable_mosaic.version = 11 : i64} {
  func.func @mlp_kernel(%arg0: i32, %arg1: memref<8x4xf32, #tpu.memory_space<vmem>>, %arg2: memref<4x32xf32, #tpu.memory_space<vmem>>, %arg3: memref<1x32xf32, #tpu.memory_space<vmem>>, %arg4: memref<32x3xf32, #tpu.memory_space<vmem>>, %arg5: memref<1x3xf32, #tpu.memory_space<vmem>>, %arg6: memref<8x3xf32, #tpu.memory_space<vmem>>) attributes {dimension_semantics = [#tpu.dimension_semantics<parallel>], iteration_bounds = array<i64: 1>, scalar_prefetch = 0 : i64, scratch_operands = 0 : i64, tpu.core_type = #tpu.core_type<tc>, window_params = [{transform_indices = @transform_0, window_bounds = array<i64: 8, 4>}, {pipeline_mode = #tpu.pipeline_mode<synchronous>, transform_indices = @transform_1, window_bounds = array<i64: 4, 32>}, {pipeline_mode = #tpu.pipeline_mode<synchronous>, transform_indices = @transform_2, window_bounds = array<i64: 1, 32>}, {pipeline_mode = #tpu.pipeline_mode<synchronous>, transform_indices = @transform_3, window_bounds = array<i64: 32, 3>}, {pipeline_mode = #tpu.pipeline_mode<synchronous>, transform_indices = @transform_4, window_bounds = array<i64: 1, 3>}, {transform_indices = @transform_5, window_bounds = array<i64: 8, 3>}]} {
    %c0 = arith.constant 0 : index
    %c0_0 = arith.constant 0 : index
    %0 = vector.load %arg1[%c0, %c0_0] : memref<8x4xf32, #tpu.memory_space<vmem>>, vector<8x4xf32>
    %c0_1 = arith.constant 0 : index
    %c0_2 = arith.constant 0 : index
    %1 = vector.load %arg2[%c0_1, %c0_2] : memref<4x32xf32, #tpu.memory_space<vmem>>, vector<4x32xf32>
    %2 = vector.extract_strided_slice %0 {offsets = [0, 0], sizes = [8, 1], strides = [1, 1]} : vector<8x4xf32> to vector<8x1xf32>
    %3 = vector.extract_strided_slice %1 {offsets = [0, 0], sizes = [1, 32], strides = [1, 1]} : vector<4x32xf32> to vector<1x32xf32>
    %4 = vector.broadcast %2 : vector<8x1xf32> to vector<8x32xf32>
    %5 = vector.broadcast %3 : vector<1x32xf32> to vector<8x32xf32>
    %6 = arith.mulf %4, %5 : vector<8x32xf32>
    %7 = vector.extract_strided_slice %0 {offsets = [0, 1], sizes = [8, 1], strides = [1, 1]} : vector<8x4xf32> to vector<8x1xf32>
    %8 = vector.extract_strided_slice %1 {offsets = [1, 0], sizes = [1, 32], strides = [1, 1]} : vector<4x32xf32> to vector<1x32xf32>
    %9 = vector.broadcast %7 : vector<8x1xf32> to vector<8x32xf32>
    %10 = vector.broadcast %8 : vector<1x32xf32> to vector<8x32xf32>
    %11 = arith.mulf %9, %10 : vector<8x32xf32>
    %12 = arith.addf %6, %11 : vector<8x32xf32>
    %13 = vector.extract_strided_slice %0 {offsets = [0, 2], sizes = [8, 1], strides = [1, 1]} : vector<8x4xf32> to vector<8x1xf32>
    %14 = vector.extract_strided_slice %1 {offsets = [2, 0], sizes = [1, 32], strides = [1, 1]} : vector<4x32xf32> to vector<1x32xf32>
    %15 = vector.broadcast %13 : vector<8x1xf32> to vector<8x32xf32>
    %16 = vector.broadcast %14 : vector<1x32xf32> to vector<8x32xf32>
    %17 = arith.mulf %15, %16 : vector<8x32xf32>
    %18 = arith.addf %12, %17 : vector<8x32xf32>
    %19 = vector.extract_strided_slice %0 {offsets = [0, 3], sizes = [8, 1], strides = [1, 1]} : vector<8x4xf32> to vector<8x1xf32>
    %20 = vector.extract_strided_slice %1 {offsets = [3, 0], sizes = [1, 32], strides = [1, 1]} : vector<4x32xf32> to vector<1x32xf32>
    %21 = vector.broadcast %19 : vector<8x1xf32> to vector<8x32xf32>
    %22 = vector.broadcast %20 : vector<1x32xf32> to vector<8x32xf32>
    %23 = arith.mulf %21, %22 : vector<8x32xf32>
    %24 = arith.addf %18, %23 : vector<8x32xf32>
    %c0_3 = arith.constant 0 : index
    %c0_4 = arith.constant 0 : index
    %25 = vector.load %arg3[%c0_3, %c0_4] : memref<1x32xf32, #tpu.memory_space<vmem>>, vector<1x32xf32>
    %26 = vector.broadcast %25 : vector<1x32xf32> to vector<8x32xf32>
    %27 = arith.addf %24, %26 : vector<8x32xf32>
    %cst = arith.constant 0.000000e+00 : f32
    %28 = vector.broadcast %cst : f32 to vector<8x32xf32>
    %29 = arith.maximumf %27, %28 : vector<8x32xf32>
    %c0_5 = arith.constant 0 : index
    %c0_6 = arith.constant 0 : index
    %30 = vector.load %arg4[%c0_5, %c0_6] : memref<32x3xf32, #tpu.memory_space<vmem>>, vector<32x3xf32>
    %cst_7 = arith.constant dense<0.000000e+00> : vector<8x3xf32>
    %31 = tpu.matmul %29, %30, %cst_7 {dimension_numbers = #tpu.dot_dimension_numbers<[1], [0], [0], [1], [0, 0, 1, 1], [], []>} : vector<8x32xf32>, vector<32x3xf32>, vector<8x3xf32> -> vector<8x3xf32>
    %c0_8 = arith.constant 0 : index
    %c0_9 = arith.constant 0 : index
    %32 = vector.load %arg5[%c0_8, %c0_9] : memref<1x3xf32, #tpu.memory_space<vmem>>, vector<1x3xf32>
    %33 = vector.broadcast %32 : vector<1x3xf32> to vector<8x3xf32>
    %34 = arith.addf %31, %33 : vector<8x3xf32>
    %c0_10 = arith.constant 0 : index
    %c0_11 = arith.constant 0 : index
    %35 = vector.load %arg6[%c0_10, %c0_11] : memref<8x3xf32, #tpu.memory_space<vmem>>, vector<8x3xf32>
    tpu.vector_store %arg6[%c0_10, %c0_11], %34 {strides = array<i32>} : memref<8x3xf32, #tpu.memory_space<vmem>>, vector<8x3xf32>,
    return
  }
  func.func @transform_0(%arg0: i32) -> (i32, i32) {
    %c0_i32 = arith.constant 0 : i32
    %c0_i32_0 = arith.constant 0 : i32
    return %arg0, %c0_i32 : i32, i32
  }
  func.func @transform_1(%arg0: i32) -> (i32, i32) {
    %c0_i32 = arith.constant 0 : i32
    %c0_i32_0 = arith.constant 0 : i32
    %c0_i32_1 = arith.constant 0 : i32
    return %c0_i32, %c0_i32_0 : i32, i32
  }
  func.func @transform_2(%arg0: i32) -> (i32, i32) {
    %c0_i32 = arith.constant 0 : i32
    %c0_i32_0 = arith.constant 0 : i32
    %c0_i32_1 = arith.constant 0 : i32
    return %c0_i32, %c0_i32_0 : i32, i32
  }
  func.func @transform_3(%arg0: i32) -> (i32, i32) {
    %c0_i32 = arith.constant 0 : i32
    %c0_i32_0 = arith.constant 0 : i32
    %c0_i32_1 = arith.constant 0 : i32
    return %c0_i32, %c0_i32_0 : i32, i32
  }
  func.func @transform_4(%arg0: i32) -> (i32, i32) {
    %c0_i32 = arith.constant 0 : i32
    %c0_i32_0 = arith.constant 0 : i32
    %c0_i32_1 = arith.constant 0 : i32
    return %c0_i32, %c0_i32_0 : i32, i32
  }
  func.func @transform_5(%arg0: i32) -> (i32, i32) {
    %c0_i32 = arith.constant 0 : i32
    %c0_i32_0 = arith.constant 0 : i32
    return %arg0, %c0_i32 : i32, i32
  }
}

</mosaic_0001>

<bundles_post_ra>
// kernel: tpu_custom_call.1
= control target key start
LH: loop header
LB: loop body
LE: loop exit
PB: predicated region body
PF: predicated region fallthrough
CT: control target
= control target key end

     0   :  { %v199_v0 = vmov 0   ;;  %v200_v2 = vmov 2   ;;  %v201_v3 = vmov 1   ;;  %v202_v4 = vmov 3   ;;  %s263_s0 = inlined_call_operand.vmem [shape: f32[8,4], index: 0, kind: input, shape index: {}]   ;;  %s264_s3 = inlined_call_operand.vmem [shape: f32[32,3], index: 3, kind: input, shape index: {}]   ;;  %s265_s1 = inlined_call_operand.vmem [shape: f32[4,32], index: 1, kind: input, shape index: {}]   ;;  %s266_s2 = inlined_call_operand.vmem [shape: f32[1,32], index: 2, kind: input, shape index: {}]   ;;  %s267_s4 = inlined_call_operand.vmem [shape: f32[1,3], index: 4, kind: input, shape index: {}]   ;;  %s268_s5 = inlined_call_operand.vmem [shape: f32[8,3], index: 5, kind: output, shape index: {}]  }
   0x1   :  { %194 = vset.pattern.permute.xlu0 %v199_v0  ;;  %v20_v1 = vld [vmem:[%s263_s0] sm:$0xff]  ;;  %196 = vset.pattern.permute.xlu1 %v200_v2  ;;  %v72_v6 = vld [vmem:[%s264_s3 + $0x8] sm:$0xff]  ;;  %v203_v8 = vmov 0.0|0.0   ;;  %v73_v9 = vld [vmem:[%s264_s3 + $0x10] sm:$0xff]  ;;  %vm204_vm0 = vmmov 0   ;;  %v205_v12 = vmov 0.0   ;;  %v27_v13 = vlaneseq }
   0x2   :  { %24 = vperm.xlu0 %194, %v20_v1   ;;  %43 = vperm.xlu1 %196, %v20_v1   ;;  %v71_v5 = vld [vmem:[%s264_s3] sm:$0xff]  ;;  %v74_v10 = vld [vmem:[%s264_s3 + $0x18] sm:$0xff]  ;;  %vm82_vm1 = vcmask 261120   ;;  %vm156_vm2 = vcmask 23552  }
   0x3   :  { %v182_v7 = vpack.c.bf16 %v72_v6, %v71_v5  ;;  %181 = vmatprep.subr.bf16.mxu0 %v203_v8  ;;  %v185_v11 = vpack.c.bf16 %v74_v10, %v73_v9  ;;  %178 = vmatprep.mubr.msk.f32.mxu0 %vm204_vm0, %v205_v12  ;;  %v28_v14 = vshrl.u32 %v27_v13, 7  ;;  %v21_v17 = vld [vmem:[%s265_s1] sm:$0xf] }
   0x4   :  { %v162_v34 = vld [vmem:[%s266_s2] ss:$0 sm:$0xff] }
   0x5   :  { %183 = vmatpush3.bf16.msra.mxu0 %v182_v7  ;;  %v29_v15 = vsub.s32 0, %v28_v14  ;;  %v38_v16 = vsub.s32 1, %v28_v14  ;;  %v48_v19 = vsub.s32 2, %v28_v14  ;;  %v58_v21 = vsub.s32 3, %v28_v14  ;;  %v163_v38 = vld [vmem:[%s267_s4] ss:$0 sm:$0xff] }
   0x6   :  { %195 = vset.pattern.permute.xlu0 %v201_v3  ;;  %197 = vset.pattern.permute.xlu1 %v202_v4 }
   0x7   :  { %33 = vperm.xlu0 %195, %v20_v1   ;;  %53 = vperm.xlu1 %197, %v20_v1   ;;  %v30_v22 = vrot.slane %v21_v17, %v29_v15  ;;  %v39_v23 = vrot.slane %v21_v17, %v38_v16  ;;  %v49_v24 = vrot.slane %v21_v17, %v48_v19 }
   0x8   :  { %184 = vmatprep.subr.bf16.mxu0 %v203_v8  ;;  %v59_v25 = vrot.slane %v21_v17, %v58_v21 }
   0x9   :  { %186 = vmatpush3.bf16.msra.mxu0 %v185_v11 }
   0xb   :  { %198 = vset.pattern.permute.xlu0 %v202_v4 }
  0x81   :  { %v25_v18 = vpop.permute.xlu0 %24  ;;  %v44_v20 = vpop.permute.xlu1 %43 }
  0x82   :  { %v31_v28 = vmul.f32 %v30_v22, %v25_v18  ;;  %v50_v30 = vmul.f32 %v49_v24, %v44_v20 }
  0x86   :  { %v34_v26 = vpop.permute.xlu0 %33  ;;  %v54_v27 = vpop.permute.xlu1 %53 }
  0x87   :  { %v40_v29 = vmul.f32 %v39_v23, %v34_v26  ;;  %v60_v32 = vmul.f32 %v59_v25, %v54_v27 }
  0x89   :  { %v41_v31 = vadd.f32 %v40_v29, %v31_v28 }
  0x8b   :  { %v51_v33 = vadd.f32 %v50_v30, %v41_v31 }
  0x8d   :  { %v61_v35 = vadd.f32 %v60_v32, %v51_v33 }
  0x8f   :  { %v69_v36 = vadd.f32 %v162_v34, %v61_v35 }
  0x91   :  { %v70_v37 = vmax.f32 %v69_v36, 0.0 }
  0x93   :  { %179 = vmatmul.mubr.msk.f32.vlgmr.msra.gmra.mrb[0].mxu0 %vm82_vm1, %v70_v37 }
 0x166   :  { %v152_v39 = vpop.f32.mrb[0].mxu0 }
 0x167   :  { %v153_v40 = vadd.f32 %v163_v38, %v152_v39  ;;  %v180_v41 = vpop.f32.mrb[1].mxu0 }
 0x169   :  { %157 = vst.msk [vmem:[%s268_s5] sm:$0xff] %vm156_vm2, %v153_v40 }

</bundles_post_ra>
